<compile_context>
chip_gen: v5e
topology: v5e:2x2
jax: 0.10.0
libtpu: 0.0.40
codegen_flags: <defaults>
</compile_context>

<pallas_src>
import functools
import math

import jax
import jax.numpy as jnp
from jax import lax
from jax.experimental import pallas as pl
from jax.experimental.pallas import tpu as pltpu

BN_EPS = 1e-5


def _round_up(x, m):
    return (x + m - 1) // m * m


def _derive_tile(hwp, c_in, c_out, max_tile_cols=None, block_vmem_budget=8 << 20):
    """Largest multiple of 128 dividing hwp that fits the VMEM block budget."""
    if max_tile_cols is None:
        # Pass-2 resident bytes per lane column (X tile + O tile), double-buffered.
        per_col = (c_in + c_out) * 4 * 2
        max_tile_cols = max(128, (block_vmem_budget // per_col) // 128 * 128)
    cap = min(max_tile_cols, hwp)
    best = 128
    t = 128
    while t <= cap:
        if hwp % t == 0:
            best = t
        t += 128
    return best


# ---------------------------------------------------------------------------
# Fully fused path: X resident in VMEM, single kernel does stats + fold + apply.
# ---------------------------------------------------------------------------
def _fused_kernel(w_ref, gamma_ref, beta_ref, x_ref, o_ref, *, n, m_true, eps):
    c_in = x_ref.shape[1]

    # Phase 1: per-channel sums + Gram matrix over all real+padded columns
    # (padded columns are zero -> exact).
    g = jnp.zeros((c_in, c_in), jnp.float32)
    s = jnp.zeros((c_in, 1), jnp.float32)
    for b in range(n):
        xb = x_ref[b].astype(jnp.float32)                         # (C_in, HWp)
        g = g + lax.dot_general(xb, xb, (((1,), (1,)), ((), ())),
                                preferred_element_type=jnp.float32)
        s = s + jnp.sum(xb, axis=1, keepdims=True)

    # BN fold (tiny):  mean = W s / M,  E[y^2] = diag(W G W^T) / M.
    w = w_ref[...].astype(jnp.float32)                            # (C_out, C_in)
    wg = jnp.dot(w, g, preferred_element_type=jnp.float32)        # (C_out, C_in)
    # W @ s without a degenerate N=1 matmul: broadcast s along lanes so every
    # column of the product equals W s, then take column 0.
    ws = jnp.dot(w, jnp.broadcast_to(s, (c_in, c_in)),
                 preferred_element_type=jnp.float32)[:, :1]       # (C_out, 1)
    mean = ws / m_true
    e_y2 = jnp.sum(wg * w, axis=1, keepdims=True) / m_true
    var = jnp.maximum(e_y2 - mean * mean, 0.0)                    # biased variance
    inv = lax.rsqrt(var + eps)
    scale = gamma_ref[...] * inv                                  # (C_out, 1)
    shift = beta_ref[...] - mean * scale
    w_fold = scale * w                                            # (C_out, C_in)

    # Phase 2: folded conv+BN+ReLU on the VMEM-resident X (no second HBM read).
    for b in range(n):
        y = jnp.dot(w_fold, x_ref[b].astype(jnp.float32),
                    preferred_element_type=jnp.float32)           # (C_out, HWp)
        o_ref[b] = jnp.maximum(y + shift, 0.0).astype(o_ref.dtype)


def _conv_bn_relu_fused(x3d_p, weight, gamma, beta, eps, m_true):
    N, C_in, HWp = x3d_p.shape
    C_out = weight.shape[0]
    w = weight.astype(jnp.float32)
    g2 = gamma.reshape(C_out, 1).astype(jnp.float32)
    b2 = beta.reshape(C_out, 1).astype(jnp.float32)

    flops = 2 * N * HWp * C_in * (C_in + C_out)
    bytes_accessed = 4 * (N * HWp * (C_in + C_out) + C_out * C_in + 2 * C_out)

    kernel = functools.partial(_fused_kernel, n=N, m_true=float(m_true),
                               eps=float(eps))
    return pl.pallas_call(
        kernel,
        out_shape=jax.ShapeDtypeStruct((N, C_out, HWp), jnp.float32),
        grid_spec=pltpu.PrefetchScalarGridSpec(
            num_scalar_prefetch=0,
            grid=(1,),
            in_specs=[
                pl.BlockSpec((C_out, C_in), lambda i: (0, 0)),
                pl.BlockSpec((C_out, 1), lambda i: (0, 0)),
                pl.BlockSpec((C_out, 1), lambda i: (0, 0)),
                pl.BlockSpec((N, C_in, HWp), lambda i: (0, 0, 0)),
            ],
            out_specs=pl.BlockSpec((N, C_out, HWp), lambda i: (0, 0, 0)),
        ),
        compiler_params=pltpu.CompilerParams(
            dimension_semantics=("arbitrary",)),
        cost_estimate=pl.CostEstimate(flops=flops, transcendentals=C_out,
                                      bytes_accessed=bytes_accessed),
    )(w, g2, b2, x3d_p)


# ---------------------------------------------------------------------------
# Two-pass fallback (large X): pass 1 = split stats, pass 2 = folded apply.
# ---------------------------------------------------------------------------
def _stats_kernel(x_ref, g_ref, s_ref):
    @pl.when((pl.program_id(1) == 0) & (pl.program_id(2) == 0))
    def _():
        g_ref[...] = jnp.zeros_like(g_ref)
        s_ref[...] = jnp.zeros_like(s_ref)

    x = x_ref[...].astype(jnp.float32)                            # (C_in, TILE_M)
    g_ref[...] += lax.dot_general(
        x, x, dimension_numbers=(((1,), (1,)), ((), ())),
        preferred_element_type=jnp.float32)                       # (C_in, C_in)
    s_ref[...] += jnp.sum(x, axis=1, keepdims=True)               # (C_in, 1)


def _apply_kernel(w_ref, shift_ref, x_ref, o_ref):
    y = jnp.dot(w_ref[...], x_ref[...].astype(jnp.float32),
                preferred_element_type=jnp.float32)               # (C_out, TILE_M)
    o_ref[...] = jnp.maximum(y + shift_ref[...], 0.0).astype(o_ref.dtype)


def _conv_bn_relu_two_pass(x3d_p, weight, gamma, beta, eps, m_true, tile_m):
    N, C_in, HWp = x3d_p.shape
    C_out = weight.shape[0]
    n_tiles = HWp // tile_m

    # Leading "parallel" split axis -> per-split partial accumulators
    # (both TensorCores on v7x; a size-1 / serial loop elsewhere).
    n_split = 2 if N % 2 == 0 else 1
    nb = N // n_split
    x_bytes = 4 * N * C_in * HWp

    g_parts, s_parts = pl.pallas_call(
        _stats_kernel,
        out_shape=(jax.ShapeDtypeStruct((n_split, C_in, C_in), jnp.float32),
                   jax.ShapeDtypeStruct((n_split, C_in, 1), jnp.float32)),
        grid_spec=pltpu.PrefetchScalarGridSpec(
            num_scalar_prefetch=0,
            grid=(n_split, nb, n_tiles),
            in_specs=[pl.BlockSpec((None, C_in, tile_m),
                                   lambda c, b, m: (c * nb + b, 0, m))],
            out_specs=(pl.BlockSpec((None, C_in, C_in), lambda c, b, m: (c, 0, 0)),
                       pl.BlockSpec((None, C_in, 1), lambda c, b, m: (c, 0, 0))),
        ),
        compiler_params=pltpu.CompilerParams(
            dimension_semantics=("parallel", "arbitrary", "arbitrary")),
        cost_estimate=pl.CostEstimate(
            flops=2 * N * HWp * C_in * C_in, transcendentals=0,
            bytes_accessed=x_bytes + 4 * n_split * (C_in * C_in + C_in)),
    )(x3d_p)
    g = g_parts.sum(axis=0)
    s = s_parts.sum(axis=0)

    # Fold training-mode BN into the conv weight (tiny, plain JAX).
    w = weight.astype(jnp.float32)                                 # (C_out, C_in)
    mean = (w @ s) / m_true                                        # (C_out, 1)
    e_y2 = jnp.sum((w @ g) * w, axis=1, keepdims=True) / m_true    # diag(W G W^T)/M
    var = jnp.maximum(e_y2 - mean * mean, 0.0)
    inv = lax.rsqrt(var + eps)
    scale = gamma.reshape(C_out, 1).astype(jnp.float32) * inv
    shift = beta.reshape(C_out, 1).astype(jnp.float32) - mean * scale
    w_fold = scale * w

    return pl.pallas_call(
        _apply_kernel,
        out_shape=jax.ShapeDtypeStruct((N, C_out, HWp), jnp.float32),
        grid_spec=pltpu.PrefetchScalarGridSpec(
            num_scalar_prefetch=0,
            grid=(N, n_tiles),
            in_specs=[
                pl.BlockSpec((C_out, C_in), lambda b, m: (0, 0)),
                pl.BlockSpec((C_out, 1), lambda b, m: (0, 0)),
                pl.BlockSpec((None, C_in, tile_m), lambda b, m: (b, 0, m)),
            ],
            out_specs=pl.BlockSpec((None, C_out, tile_m), lambda b, m: (b, 0, m)),
        ),
        compiler_params=pltpu.CompilerParams(
            dimension_semantics=("parallel", "parallel")),
        cost_estimate=pl.CostEstimate(
            flops=2 * N * HWp * C_in * C_out, transcendentals=0,
            bytes_accessed=x_bytes + 4 * N * C_out * HWp + 4 * C_out * (C_in + 1)),
    )(w_fold, shift, x3d_p)


# ---------------------------------------------------------------------------
# Public wrapper
# ---------------------------------------------------------------------------
def conv_bn_relu(x_nchw, weight, gamma, beta, eps=BN_EPS,
                 fused_vmem_budget_bytes=10 << 20, max_tile_cols=None):
    """x_nchw: (N, C_in, H, W); weight: (C_out, C_in) for the 1x1 conv."""
    N, C_in, H, W = x_nchw.shape
    C_out = weight.shape[0]
    HW = H * W
    M = N * HW                                  # true element count for BN stats

    HWp = _round_up(HW, 128)                    # lane-dense, (8,128)-aligned blocks
    x3d = x_nchw.reshape(N, C_in, HW)           # NCHW is already channel-major
    if HWp != HW:
        x3d = jnp.pad(x3d, ((0, 0), (0, 0), (0, HWp - HW)))   # zeros: exact stats

    # Single fused kernel when X + O (double-buffered) comfortably fit VMEM
    # on every generation (incl. v7x's 64 MiB); else the tiled two-pass path.
    fused_bytes = 2 * 4 * N * HWp * (C_in + C_out)
    if fused_bytes <= fused_vmem_budget_bytes and N <= 16:
        out3d = _conv_bn_relu_fused(x3d, weight, gamma, beta, eps, M)
    else:
        tile_m = _derive_tile(HWp, C_in, C_out, max_tile_cols=max_tile_cols)
        out3d = _conv_bn_relu_two_pass(x3d, weight, gamma, beta, eps, M, tile_m)

    return out3d[:, :, :HW].reshape(N, C_out, H, W)


def _reference(x_nchw, weight, gamma, beta):
    # Pure-JAX reference (same math as PyTorch training-mode forward).
    N, C_in, H, W = x_nchw.shape
    C_out = weight.shape[0]
    x2d = jnp.transpose(x_nchw, (0, 2, 3, 1)).reshape(-1, C_in)
    y = x2d @ weight.T                                   # (M, C_out)
    mean = jnp.mean(y, axis=0, keepdims=True)
    var = jnp.mean((y - mean) ** 2, axis=0, keepdims=True)
    y = (y - mean) / jnp.sqrt(var + BN_EPS) * gamma + beta
    y = jnp.maximum(y, 0.0)
    return y.reshape(N, H, W, C_out).transpose(0, 3, 1, 2)


if __name__ == "__main__":
    key = jax.random.PRNGKey(0)
    kx1, kx2, kw = jax.random.split(key, 3)

    # Module config: Conv_BN_ReLU(in_planes=4, out_planes=8)  (kernel_size=1 default)
    C_in, C_out = 4, 8
    std = math.sqrt(2.0 / (1 * 1 * C_out))               # conv init: N(0, sqrt(2/n))
    weight = std * jax.random.normal(kw, (C_out, C_in), dtype=jnp.float32)
    gamma = jnp.ones((C_out,), dtype=jnp.float32)         # BN weight init
    beta = jnp.zeros((C_out,), dtype=jnp.float32)         # BN bias init

    # 1) Default (fused-in-VMEM) path, HW already a multiple of 128.
    x1 = jax.random.normal(kx1, (2, C_in, 16, 16), dtype=jnp.float32)
    out1 = conv_bn_relu(x1, weight, gamma, beta)
    jax.block_until_ready(out1)
    ref1 = _reference(x1, weight, gamma, beta)
    assert out1.shape == (2, C_out, 16, 16)
    assert jnp.allclose(out1, ref1, atol=1e-4, rtol=1e-4), "fused path mismatch"

    # 2) Two-pass path (forced): HW=400 padded to 512, 4 M-tiles, split stats.
    x2 = jax.random.normal(kx2, (2, C_in, 20, 20), dtype=jnp.float32)
    ref2 = _reference(x2, weight, gamma, beta)
    out2 = conv_bn_relu(x2, weight, gamma, beta,
                        fused_vmem_budget_bytes=0, max_tile_cols=128)
    jax.block_until_ready(out2)
    assert out2.shape == (2, C_out, 20, 20)
    assert jnp.allclose(out2, ref2, atol=1e-4, rtol=1e-4), "two-pass mismatch"

    # 3) Fused path with lane padding (HW=400 -> 512).
    out3 = conv_bn_relu(x2, weight, gamma, beta)
    jax.block_until_ready(out3)
    assert jnp.allclose(out3, ref2, atol=1e-4, rtol=1e-4), "fused+pad mismatch"

    print("KERNEL_OK")
</pallas_src>

<mosaic_0001>
module attributes {stable_mosaic.version = 11 : i64} {
  func.func @_fused_kernel(%arg0: i32, %arg1: memref<8x4xf32, #tpu.memory_space<vmem>>, %arg2: memref<8x1xf32, #tpu.memory_space<vmem>>, %arg3: memref<8x1xf32, #tpu.memory_space<vmem>>, %arg4: memref<2x4x256xf32, #tpu.memory_space<vmem>>, %arg5: memref<2x8x256xf32, #tpu.memory_space<vmem>>) attributes {dimension_semantics = [#tpu.dimension_semantics<arbitrary>], iteration_bounds = array<i64: 1>, scalar_prefetch = 0 : i64, scratch_operands = 0 : i64, tpu.core_type = #tpu.core_type<tc>, window_params = [{pipeline_mode = #tpu.pipeline_mode<synchronous>, transform_indices = @transform_0, window_bounds = array<i64: 8, 4>}, {pipeline_mode = #tpu.pipeline_mode<synchronous>, transform_indices = @transform_1, window_bounds = array<i64: 8, 1>}, {pipeline_mode = #tpu.pipeline_mode<synchronous>, transform_indices = @transform_2, window_bounds = array<i64: 8, 1>}, {pipeline_mode = #tpu.pipeline_mode<synchronous>, transform_indices = @transform_3, window_bounds = array<i64: 2, 4, 256>}, {pipeline_mode = #tpu.pipeline_mode<synchronous>, transform_indices = @transform_4, window_bounds = array<i64: 2, 8, 256>}]} {
    %cst = arith.constant 0.000000e+00 : f32
    %0 = vector.broadcast %cst : f32 to vector<4x4xf32>
    %cst_0 = arith.constant 0.000000e+00 : f32
    %1 = vector.broadcast %cst_0 : f32 to vector<4x1xf32>
    %c0 = arith.constant 0 : index
    %c0_1 = arith.constant 0 : index
    %c0_2 = arith.constant 0 : index
    %2 = vector.load %arg4[%c0, %c0_1, %c0_2] : memref<2x4x256xf32, #tpu.memory_space<vmem>>, vector<1x4x256xf32>
    %3 = vector.shape_cast %2 : vector<1x4x256xf32> to vector<4x256xf32>
    %cst_3 = arith.constant dense<0.000000e+00> : vector<4x4xf32>
    %4 = tpu.matmul %3, %3, %cst_3 {dimension_numbers = #tpu.dot_dimension_numbers<[1], [1], [0], [0], [0, 0, 1, 0], [], []>} : vector<4x256xf32>, vector<4x256xf32>, vector<4x4xf32> -> vector<4x4xf32>
    %5 = arith.addf %0, %4 : vector<4x4xf32>
    %cst_4 = arith.constant dense<0.000000e+00> : vector<4xf32>
    %6 = vector.multi_reduction <add>, %3, %cst_4 [1] : vector<4x256xf32> to vector<4xf32>
    %7 = vector.shape_cast %6 : vector<4xf32> to vector<4x1xf32>
    %8 = arith.addf %1, %7 : vector<4x1xf32>
    %c1 = arith.constant 1 : index
    %c0_5 = arith.constant 0 : index
    %c0_6 = arith.constant 0 : index
    %9 = vector.load %arg4[%c1, %c0_5, %c0_6] : memref<2x4x256xf32, #tpu.memory_space<vmem>>, vector<1x4x256xf32>
    %10 = vector.shape_cast %9 : vector<1x4x256xf32> to vector<4x256xf32>
    %cst_7 = arith.constant dense<0.000000e+00> : vector<4x4xf32>
    %11 = tpu.matmul %10, %10, %cst_7 {dimension_numbers = #tpu.dot_dimension_numbers<[1], [1], [0], [0], [0, 0, 1, 0], [], []>} : vector<4x256xf32>, vector<4x256xf32>, vector<4x4xf32> -> vector<4x4xf32>
    %12 = arith.addf %5, %11 : vector<4x4xf32>
    %cst_8 = arith.constant dense<0.000000e+00> : vector<4xf32>
    %13 = vector.multi_reduction <add>, %10, %cst_8 [1] : vector<4x256xf32> to vector<4xf32>
    %14 = vector.shape_cast %13 : vector<4xf32> to vector<4x1xf32>
    %15 = arith.addf %8, %14 : vector<4x1xf32>
    %c0_9 = arith.constant 0 : index
    %c0_10 = arith.constant 0 : index
    %16 = vector.load %arg1[%c0_9, %c0_10] : memref<8x4xf32, #tpu.memory_space<vmem>>, vector<8x4xf32>
    %cst_11 = arith.constant dense<0.000000e+00> : vector<8x4xf32>
    %17 = tpu.matmul %16, %12, %cst_11 {dimension_numbers = #tpu.dot_dimension_numbers<[1], [0], [0], [1], [0, 0, 1, 1], [], []>} : vector<8x4xf32>, vector<4x4xf32>, vector<8x4xf32> -> vector<8x4xf32>
    %18 = vector.shape_cast %15 : vector<4x1xf32> to vector<4x1xf32>
    %19 = vector.broadcast %18 : vector<4x1xf32> to vector<4x4xf32>
    %cst_12 = arith.constant dense<0.000000e+00> : vector<8x4xf32>
    %20 = tpu.matmul %16, %19, %cst_12 {dimension_numbers = #tpu.dot_dimension_numbers<[1], [0], [0], [1], [0, 0, 1, 1], [], []>} : vector<8x4xf32>, vector<4x4xf32>, vector<8x4xf32> -> vector<8x4xf32>
    %21 = vector.extract_strided_slice %20 {offsets = [0, 0], sizes = [8, 1], strides = [1, 1]} : vector<8x4xf32> to vector<8x1xf32>
    %cst_13 = arith.constant 5.120000e+02 : f32
    %22 = vector.broadcast %cst_13 : f32 to vector<8x1xf32>
    %23 = arith.divf %21, %22 : vector<8x1xf32>
    %24 = arith.mulf %17, %16 : vector<8x4xf32>
    %cst_14 = arith.constant dense<0.000000e+00> : vector<8xf32>
    %25 = vector.multi_reduction <add>, %24, %cst_14 [1] : vector<8x4xf32> to vector<8xf32>
    %26 = vector.shape_cast %25 : vector<8xf32> to vector<8x1xf32>
    %cst_15 = arith.constant 5.120000e+02 : f32
    %27 = vector.broadcast %cst_15 : f32 to vector<8x1xf32>
    %28 = arith.divf %26, %27 : vector<8x1xf32>
    %29 = arith.mulf %23, %23 : vector<8x1xf32>
    %30 = arith.subf %28, %29 : vector<8x1xf32>
    %cst_16 = arith.constant 0.000000e+00 : f32
    %31 = vector.broadcast %cst_16 : f32 to vector<8x1xf32>
    %32 = arith.maximumf %30, %31 : vector<8x1xf32>
    %cst_17 = arith.constant 9.99999974E-6 : f32
    %33 = vector.broadcast %cst_17 : f32 to vector<8x1xf32>
    %34 = arith.addf %32, %33 : vector<8x1xf32>
    %35 = math.rsqrt %34 : vector<8x1xf32>
    %c0_18 = arith.constant 0 : index
    %c0_19 = arith.constant 0 : index
    %36 = vector.load %arg2[%c0_18, %c0_19] : memref<8x1xf32, #tpu.memory_space<vmem>>, vector<8x1xf32>
    %37 = arith.mulf %36, %35 : vector<8x1xf32>
    %c0_20 = arith.constant 0 : index
    %c0_21 = arith.constant 0 : index
    %38 = vector.load %arg3[%c0_20, %c0_21] : memref<8x1xf32, #tpu.memory_space<vmem>>, vector<8x1xf32>
    %39 = arith.mulf %23, %37 : vector<8x1xf32>
    %40 = arith.subf %38, %39 : vector<8x1xf32>
    %41 = vector.broadcast %37 : vector<8x1xf32> to vector<8x4xf32>
    %42 = arith.mulf %41, %16 : vector<8x4xf32>
    %c0_22 = arith.constant 0 : index
    %c0_23 = arith.constant 0 : index
    %c0_24 = arith.constant 0 : index
    %43 = vector.load %arg4[%c0_22, %c0_23, %c0_24] : memref<2x4x256xf32, #tpu.memory_space<vmem>>, vector<1x4x256xf32>
    %44 = vector.shape_cast %43 : vector<1x4x256xf32> to vector<4x256xf32>
    %cst_25 = arith.constant dense<0.000000e+00> : vector<8x256xf32>
    %45 = tpu.matmul %42, %44, %cst_25 {dimension_numbers = #tpu.dot_dimension_numbers<[1], [0], [0], [1], [0, 0, 1, 1], [], []>} : vector<8x4xf32>, vector<4x256xf32>, vector<8x256xf32> -> vector<8x256xf32>
    %46 = vector.broadcast %40 : vector<8x1xf32> to vector<8x256xf32>
    %47 = arith.addf %45, %46 : vector<8x256xf32>
    %cst_26 = arith.constant 0.000000e+00 : f32
    %48 = vector.broadcast %cst_26 : f32 to vector<8x256xf32>
    %49 = arith.maximumf %47, %48 : vector<8x256xf32>
    %c0_27 = arith.constant 0 : index
    %c0_28 = arith.constant 0 : index
    %c0_29 = arith.constant 0 : index
    %50 = vector.load %arg5[%c0_27, %c0_28, %c0_29] : memref<2x8x256xf32, #tpu.memory_space<vmem>>, vector<1x8x256xf32>
    %51 = vector.shape_cast %50 : vector<1x8x256xf32> to vector<8x256xf32>
    %52 = vector.shape_cast %49 : vector<8x256xf32> to vector<1x8x256xf32>
    tpu.vector_store %arg5[%c0_27, %c0_28, %c0_29], %52 {strides = array<i32>} : memref<2x8x256xf32, #tpu.memory_space<vmem>>, vector<1x8x256xf32>,
    %c1_30 = arith.constant 1 : index
    %c0_31 = arith.constant 0 : index
    %c0_32 = arith.constant 0 : index
    %53 = vector.load %arg4[%c1_30, %c0_31, %c0_32] : memref<2x4x256xf32, #tpu.memory_space<vmem>>, vector<1x4x256xf32>
    %54 = vector.shape_cast %53 : vector<1x4x256xf32> to vector<4x256xf32>
    %cst_33 = arith.constant dense<0.000000e+00> : vector<8x256xf32>
    %55 = tpu.matmul %42, %54, %cst_33 {dimension_numbers = #tpu.dot_dimension_numbers<[1], [0], [0], [1], [0, 0, 1, 1], [], []>} : vector<8x4xf32>, vector<4x256xf32>, vector<8x256xf32> -> vector<8x256xf32>
    %56 = vector.broadcast %40 : vector<8x1xf32> to vector<8x256xf32>
    %57 = arith.addf %55, %56 : vector<8x256xf32>
    %cst_34 = arith.constant 0.000000e+00 : f32
    %58 = vector.broadcast %cst_34 : f32 to vector<8x256xf32>
    %59 = arith.maximumf %57, %58 : vector<8x256xf32>
    %c1_35 = arith.constant 1 : index
    %c0_36 = arith.constant 0 : index
    %c0_37 = arith.constant 0 : index
    %60 = vector.load %arg5[%c1_35, %c0_36, %c0_37] : memref<2x8x256xf32, #tpu.memory_space<vmem>>, vector<1x8x256xf32>
    %61 = vector.shape_cast %60 : vector<1x8x256xf32> to vector<8x256xf32>
    %62 = vector.shape_cast %59 : vector<8x256xf32> to vector<1x8x256xf32>
    tpu.vector_store %arg5[%c1_35, %c0_36, %c0_37], %62 {strides = array<i32>} : memref<2x8x256xf32, #tpu.memory_space<vmem>>, vector<1x8x256xf32>,
    return
  }
  func.func @transform_0(%arg0: i32) -> (i32, i32) {
    %c0_i32 = arith.constant 0 : i32
    %c0_i32_0 = arith.constant 0 : i32
    %c0_i32_1 = arith.constant 0 : i32
    return %c0_i32, %c0_i32_0 : i32, i32
  }
  func.func @transform_1(%arg0: i32) -> (i32, i32) {
    %c0_i32 = arith.constant 0 : i32
    %c0_i32_0 = arith.constant 0 : i32
    %c0_i32_1 = arith.constant 0 : i32
    return %c0_i32, %c0_i32_0 : i32, i32
  }
  func.func @transform_2(%arg0: i32) -> (i32, i32) {
    %c0_i32 = arith.constant 0 : i32
    %c0_i32_0 = arith.constant 0 : i32
    %c0_i32_1 = arith.constant 0 : i32
    return %c0_i32, %c0_i32_0 : i32, i32
  }
  func.func @transform_3(%arg0: i32) -> (i32, i32, i32) {
    %c0_i32 = arith.constant 0 : i32
    %c0_i32_0 = arith.constant 0 : i32
    %c0_i32_1 = arith.constant 0 : i32
    %c0_i32_2 = arith.constant 0 : i32
    return %c0_i32, %c0_i32_0, %c0_i32_1 : i32, i32, i32
  }
  func.func @transform_4(%arg0: i32) -> (i32, i32, i32) {
    %c0_i32 = arith.constant 0 : i32
    %c0_i32_0 = arith.constant 0 : i32
    %c0_i32_1 = arith.constant 0 : i32
    %c0_i32_2 = arith.constant 0 : i32
    return %c0_i32, %c0_i32_0, %c0_i32_1 : i32, i32, i32
  }
}

</mosaic_0001>

<bundles_post_ra>
// kernel: tpu_custom_call.1
= control target key start
LH: loop header
LB: loop body
LE: loop exit
PB: predicated region body
PF: predicated region fallthrough
CT: control target
= control target key end

     0   :  { %s495_s0 = inlined_call_operand.vmem [shape: f32[8,4], index: 0, kind: input, shape index: {}]   ;;  %s496_s1 = inlined_call_operand.vmem [shape: f32[8,1], index: 1, kind: input, shape index: {}]   ;;  %s497_s2 = inlined_call_operand.vmem [shape: f32[8,1], index: 2, kind: input, shape index: {}]   ;;  %s498_s3 = inlined_call_operand.vmem [shape: f32[2,4,256], index: 3, kind: input, shape index: {}]   ;;  %s499_s4 = inlined_call_operand.hbm [shape: f32[2,8,256], index: 4, kind: output, shape index: {}]  }
   0x1   :  { %v18_v0 = vld [vmem:[%s498_s3] sm:$0xff] }
   0x2   :  { %9 = vsyncpa [#allocation3], 0  ;;  %20 = vst [vmem:[#allocation1] ss:$2 sm:$0xff] %v18_v0  ;;  %v454_v1 = vld [vmem:[%s498_s3 + $0x8] sm:$0xff]  ;;  %vm25_vm0 = vcmask 1043456  }
   0x3   :  { %v466_v25 = vld [vmem:[%s495_s0] sm:$0xff]  ;;  %vm147_vm1 = vcmask 31744   ;;  %v418_v34 = vmov 512.0   ;;  %v419_v40 = vmov 0   ;;  %s354_s25 = sshll.u32 %s499_s4, 4  ;;  %s421_s26 = smov 256   ;;  %s355_s25 = int_to_ptr.hbm [resolvable:$true] %s354_s25 }
   0x4   :  { %388 = vrcp.f32 %v418_v34  ;;  %385 = vset.pattern.permute.xlu1 %v419_v40  ;;  %386 = vset.pattern.permute.xlu2 %v419_v40  ;;  %v224_v56 = vld [vmem:[%s496_s1] sm:$0xff]  ;;  %s420_s1 = smov [#allocation2]   ;;  %s422_s27 = smov 16  }
   0x5   :  { %387 = vset.pattern.permute.xlu0 %v419_v40  ;;  %v226_v59 = vld [vmem:[%s497_s2] sm:$0xff]  ;;  %s352_s2 = sshll.u32 %s420_s1, 4  ;;  %s353_s2 = int_to_ptr.vmem [resolvable:$true] %s352_s2 }
   0x9   :  { %v21_v2 = vld.sshfl [vmem:[#allocation1] sm:$0xff pattern:$0x75316420]  ;;  %v22_v3 = vld.sshfl [vmem:[#allocation1 + $0x8] sm:$0xff pattern:$0x75316420] }
   0xa   :  { %35 = vst [vmem:[#allocation1] ss:$2 sm:$0xff] %v454_v1  ;;  %v26_v4 = vsel %vm25_vm0, %v21_v2, 0.0  ;;  %v27_v5 = vsel %vm25_vm0, %v22_v3, 0.0  ;;  %v389_v35 = vpop.eup %388 }
   0xb   :  { %v28_v6 = vadd.f32 %v27_v5, %v26_v4  ;;  %v198_v36 = vmul.f32 512.0, %v389_v35  ;;  %vm202_vm2 = vweird.f32 %v389_v35 }
   0xd   :  { %29 = vadd.xlane.f32.xlu0 %v28_v6  ;;  %v199_v37 = vsub.f32 1.0, %v198_v36 }
   0xf   :  { %v200_v38 = vmul.f32 %v389_v35, %v199_v37 }
  0x11   :  { %v36_v7 = vld.sshfl [vmem:[#allocation1] sm:$0xff pattern:$0x75316420]  ;;  %v37_v8 = vld.sshfl [vmem:[#allocation1 + $0x8] sm:$0xff pattern:$0x75316420]  ;;  %v201_v39 = vadd.f32 %v389_v35, %v200_v38 }
  0x12   :  { %40 = vst [vmem:[#allocation1] ss:$2 sm:$0xff] %v454_v1 }
  0x13   :  { %v203_v42 = vsel %vm202_vm2, %v389_v35, %v201_v39 }
  0x19   :  { %v41_v9 = vld.sshfl [vmem:[#allocation1] sm:$0xff pattern:$0x75316420]  ;;  %v42_v10 = vld.sshfl [vmem:[#allocation1 + $0x8] sm:$0xff pattern:$0x75316420] }
  0x1a   :  { %85 = vst [vmem:[#allocation1] ss:$2 sm:$0xff] %v18_v0  ;;  %60 = vmatpush.xpose.msra.mxu0 %v41_v9  ;;  %80 = vmatpush.xpose.msra.mxu1 %v42_v10 }
  0x1d   :  { %61 = vmatmul.f32.vlgmr.msra.gmra.mxu0 %v36_v7  ;;  %81 = vmatmul.f32.vlgmr.msra.gmra.mxu1 %v37_v8 }
  0x21   :  { %v86_v11 = vld.sshfl [vmem:[#allocation1] sm:$0xff pattern:$0x75316420]  ;;  %v87_v12 = vld.sshfl [vmem:[#allocation1 + $0x8] sm:$0xff pattern:$0x75316420] }
  0x22   :  { %90 = vst [vmem:[#allocation1] ss:$2 sm:$0xff] %v18_v0 }
  0x29   :  { %v91_v13 = vld.sshfl [vmem:[#allocation1] sm:$0xff pattern:$0x75316420]  ;;  %v92_v14 = vld.sshfl [vmem:[#allocation1 + $0x8] sm:$0xff pattern:$0x75316420] }
  0x2a   :  { %110 = vmatpush.xpose.msra.mxu2 %v91_v13  ;;  %130 = vmatpush.xpose.msra.mxu3 %v92_v14  ;;  %135 = vst [vmem:[#allocation1] ss:$2 sm:$0xff] %v454_v1 }
  0x2d   :  { %111 = vmatmul.f32.vlgmr.msra.gmra.mxu2 %v86_v11  ;;  %131 = vmatmul.f32.vlgmr.msra.gmra.mxu3 %v87_v12 }
  0x31   :  { %v136_v15 = vld.sshfl [vmem:[#allocation1] sm:$0xff pattern:$0x75316420]  ;;  %v137_v16 = vld.sshfl [vmem:[#allocation1 + $0x8] sm:$0xff pattern:$0x75316420] }
  0x32   :  { %v140_v17 = vsel %vm25_vm0, %v136_v15, 0.0  ;;  %v141_v18 = vsel %vm25_vm0, %v137_v16, 0.0  ;;  %240 = vst [vmem:[#allocation1] ss:$2 sm:$0xff] %v18_v0 }
  0x33   :  { %v142_v19 = vadd.f32 %v141_v18, %v140_v17 }
  0x35   :  { %143 = vadd.xlane.f32.xlu0 %v142_v19 }
  0x39   :  { %v241_v62 = vld.sshfl [vmem:[#allocation1] sm:$0xff pattern:$0x75316420]  ;;  %v242_v63 = vld.sshfl [vmem:[#allocation1 + $0x8] sm:$0xff pattern:$0x75316420] }
  0x3a   :  { %371 = vmatpush.msk.msrb.mxu2 %vm25_vm0, %v241_v62  ;;  %373 = vmatpush.msk.msrb.mxu3 %vm25_vm0, %v242_v63  ;;  %296 = vst [vmem:[#allocation1] ss:$2 sm:$0xff] %v454_v1 }
  0x41   :  { %v297_v0 = vld.sshfl [vmem:[#allocation1] sm:$0xff pattern:$0x75316420]  ;;  %v298_v2 = vld.sshfl [vmem:[#allocation1 + $0x8] sm:$0xff pattern:$0x75316420] }
  0x80   :  { %v30_v20 = vpop.xlane.xlu0 %29 }
  0x9a   :  { %v62_v23 = vpop.f32.mrf.mxu0  ;;  %v82_v24 = vpop.f32.mrf.mxu1 }
  0x9b   :  { %v83_v26 = vadd.f32 %v82_v24, %v62_v23 }
  0xa8   :  { %v144_v21 = vpop.xlane.xlu0 %143 }
  0xa9   :  { %v145_v22 = vadd.f32 %v144_v21, %v30_v20 }
  0xab   :  { %369 = vmatpush.msk.msrb.mxu1 %vm25_vm0, %v145_v22 }
  0xac   :  { %370 = vmatmul.msk.f32.vlgmr.msrb.gmra.mxu1 %vm147_vm1, %v466_v25 }
  0xad   :  { %378 = vmatpush.msk.msra.mxu1 %vm25_vm0, %v298_v2 }
  0xb0   :  { %v112_v27 = vpop.f32.mrf.mxu2  ;;  %v132_v28 = vpop.f32.mrf.mxu3 }
  0xb1   :  { %v113_v29 = vadd.f32 %v112_v27, %v83_v26 }
  0xb3   :  { %v133_v30 = vadd.f32 %v132_v28, %v113_v29 }
  0xb5   :  { %367 = vmatpush.msk.msrb.mxu0 %vm25_vm0, %v133_v30 }
  0xb6   :  { %368 = vmatmul.msk.f32.vlgmr.msrb.gmra.mxu0 %vm147_vm1, %v466_v25 }
  0xb7   :  { %376 = vmatpush.msk.msra.mxu0 %vm25_vm0, %v297_v0 }
 0x129   :  { %v194_v41 = vpop.f32.mrf.mxu1 }
 0x12a   :  { %v204_v43 = vmul.f32 %v203_v42, %v194_v41 }
 0x12c   :  { %v210_v44 = vmul.f32 %v204_v43, %v204_v43 }
 0x133   :  { %v171_v31 = vpop.f32.mrf.mxu0 }
 0x134   :  { %v205_v32 = vmul.f32 %v171_v31, %v466_v25 }
 0x136   :  { %v206_v33 = vsel %vm147_vm1, %v205_v32, 0.0 }
 0x137   :  { %207 = vadd.xlane.f32.xlu1 %v206_v33 }
 0x1aa   :  { %v208_v45 = vpop.xlane.xlu1 %207 }
 0x1ab   :  { %v209_v46 = vmul.f32 %v208_v45, %v203_v42 }
 0x1ad   :  { %v211_v47 = vsub.f32 %v209_v46, %v210_v44 }
 0x1af   :  { %v212_v48 = vmax.f32 %v211_v47, 0.0 }
 0x1b1   :  { %v213_v49 = vadd.f32 1e-05, %v212_v48 }
 0x1b3   :  { %390 = vrsqrt.f32 %v213_v49  ;;  %vm220_vm4 = vweird.f32 %v213_v49 }
 0x1b9   :  { %v391_v50 = vpop.eup %390 }
 0x1ba   :  { %v215_v51 = vmul.f32 %v391_v50, %v213_v49  ;;  %vm221_vm3 = vweird.f32 %v391_v50 }
 0x1bb   :  { %vm222_vm5 = vmor %vm220_vm4, %vm221_vm3 }
 0x1bc   :  { %v216_v52 = vmul.f32 %v391_v50, %v215_v51 }
 0x1be   :  { %v217_v53 = vmul.f32 0.5, %v216_v52 }
 0x1c0   :  { %v218_v54 = vsub.f32 1.5, %v217_v53 }
 0x1c2   :  { %v219_v55 = vmul.f32 %v391_v50, %v218_v54 }
 0x1c4   :  { %v223_v57 = vsel %vm222_vm5, %v391_v50, %v219_v55 }
 0x1c5   :  { %v225_v58 = vmul.f32 %v224_v56, %v223_v57 }
 0x1c7   :  { %231 = vperm.xlu1 %385, %v225_v58   ;;  %v227_v60 = vmul.f32 %v225_v58, %v204_v43 }
 0x1c9   :  { %v228_v61 = vsub.f32 %v226_v59, %v227_v60 }
 0x1cb   :  { %237 = vperm.xlu2 %386, %v228_v61  }
 0x225   :  { %v238_v5 = vpop.permute.xlu2 %237 }
 0x239   :  { %v232_v3 = vpop.permute.xlu1 %231 }
 0x23a   :  { %v234_v4 = vmul.f32 %v232_v3, %v466_v25 }
 0x23c   :  { %372 = vmatmul.msk.f32.vlgmr.msrb.gmra.mxu2 %vm147_vm1, %v234_v4  ;;  %374 = vmatmul.msk.f32.vlgmr.msrb.gmra.mxu3 %vm147_vm1, %v234_v4 }
 0x23d   :  { %377 = vmatmul.msk.f32.vlgmr.msra.gmra.mxu0 %vm147_vm1, %v234_v4  ;;  %379 = vmatmul.msk.f32.vlgmr.msra.gmra.mxu1 %vm147_vm1, %v234_v4 }
 0x2ba   :  { %v320_v6 = vpop.f32.mrf.mxu0  ;;  %v340_v1 = vpop.f32.mrf.mxu1 }
 0x2bb   :  { %v321_v7 = vadd.f32 %v320_v6, %v238_v5  ;;  %v341_v8 = vadd.f32 %v340_v1, %v238_v5 }
 0x2bd   :  { %v343_v9 = vmax.f32 %v321_v7, 0.0  ;;  %v344_v10 = vmax.f32 %v341_v8, 0.0 }
 0x2bf   :  { %346 = vst [vmem:[#allocation2 + $0x10] sm:$0xff] %v343_v9  ;;  %v267_v11 = vpop.f32.mrf.mxu2  ;;  %v287_v12 = vpop.f32.mrf.mxu3 }
 0x2c0   :  { %347 = vst [vmem:[#allocation2 + $0x18] sm:$0xff] %v344_v10  ;;  %v268_v13 = vadd.f32 %v267_v11, %v238_v5  ;;  %v288_v14 = vadd.f32 %v287_v12, %v238_v5 }
 0x2c2   :  { %v290_v15 = vmax.f32 %v268_v13, 0.0  ;;  %v291_v16 = vmax.f32 %v288_v14, 0.0 }
 0x2c4   :  { %292 = vst [vmem:[#allocation2] sm:$0xff] %v290_v15 }
 0x2c5   :  { %293 = vst [vmem:[#allocation2 + $0x8] sm:$0xff] %v291_v16 }
 0x2c6   :  { %360 = dma.vmem_to_hbm [thread:$0]  %s353_s2, 512, %s355_s25, [#allocation3], %s421_s26, %s421_s26, %s422_s27  }
 0x2c7   :  { %416 = dma.done.wait [#allocation3], 512  }
 0x2c8   :  { %417 = vsyncadd [#allocation3], 4294966784 }
 0x2c9   :  { %365 = vsyncpa [#allocation3], 1 }

</bundles_post_ra>
